<compile_context>
chip_gen: v6e
topology: v6e:2x2x1
jax: 0.10.0
libtpu: 0.0.40
codegen_flags: <defaults>
</compile_context>

<pallas_src>
import jax
import jax.numpy as jnp
from jax.experimental import pallas as pl
from jax.experimental.pallas import tpu as pltpu

_LANE = 128
_MIB = 1024 * 1024


def _round_up(x, m):
    return ((x + m - 1) // m) * m


def _sublane_multiple(dtype):
    # f32 -> 8, bf16/f16 -> 16, int8/fp8 -> 32 (sub-32-bit packs along sublanes)
    return max(8, 32 // jnp.dtype(dtype).itemsize)


def _padded_tile_bytes(rows, cols, dtype):
    """VMEM footprint of a (rows, cols) tile after (sublane, lane) padding."""
    dt = jnp.dtype(dtype)
    rp = _round_up(max(int(rows), 1), _sublane_multiple(dt))
    cp = _round_up(max(int(cols), 1), _LANE)
    return rp * cp * dt.itemsize


def _vmem_capacity_bytes():
    try:
        info = pltpu.get_tpu_info()
        cap = int(getattr(info, "vmem_capacity_bytes", 0) or 0)
        if cap > 0:
            return cap
    except Exception:
        pass
    return 64 * _MIB  # conservative fallback: v7x per-TensorCore capacity


def _pool_last_linear_kernel(x_ref, w_ref, b_ref, out_ref):
    # x_ref: (B_TILE, C, HW) -- global avg pool over the last (lane) axis.
    # w_ref: (C, nattr_pad) f32, already transposed and pre-scaled by 1/(H*W).
    # TODO(synk): on v6e/v7x with bf16 4D inputs the lane-axis reduce can make
    # the 2-port XLU the binding slot; if a bundle dump confirms it, offload the
    # final 128-lane reduction to the idle MXU (VALU lane-block adds followed by
    # a dot against a ones column) instead of jnp.sum over the full HW axis.
    x = x_ref[...].astype(jnp.float32)
    pooled = jnp.sum(x, axis=-1)                                  # (B_TILE, C)
    out_ref[...] = (
        jnp.dot(pooled, w_ref[...], preferred_element_type=jnp.float32)
        + b_ref[...]
    )


def _pool_mid_linear_kernel(x_ref, w_ref, b_ref, out_ref):
    # x_ref: (B_TILE, HW, C) -- global avg pool over the middle (sublane) axis.
    x = x_ref[...].astype(jnp.float32)
    pooled = jnp.sum(x, axis=1)                                   # (B_TILE, C)
    out_ref[...] = (
        jnp.dot(pooled, w_ref[...], preferred_element_type=jnp.float32)
        + b_ref[...]
    )


def _run_pooled_linear(x, kernel, inner_shape, weight_scaled_t, bias):
    """x: (B, *inner_shape) feature; returns (B, nattr) float32 logits."""
    B = int(x.shape[0])
    C, nattr = int(weight_scaled_t.shape[0]), int(weight_scaled_t.shape[1])
    nattr_pad = _round_up(nattr, _LANE)
    d0, d1 = int(inner_shape[0]), int(inner_shape[1])

    # Pad the (tiny) weight / bias so output stores are lane-dense (128-wide).
    w_pad = jnp.zeros((C, nattr_pad), jnp.float32).at[:, :nattr].set(
        weight_scaled_t.astype(jnp.float32))
    b_pad = jnp.zeros((1, nattr_pad), jnp.float32).at[:, :nattr].set(
        bias.reshape(1, nattr).astype(jnp.float32))

    # ---- generation-aware VMEM sizing (padded-tile accounting) ----
    cap = _vmem_capacity_bytes()
    # ~3/4 of physical VMEM: 96 MiB on 128 MiB parts (v5e/v6e), 48 MiB on v7x.
    vmem_limit = max(16 * _MIB, min((cap * 3) // 4, cap - 8 * _MIB))

    fixed = (2 * _padded_tile_bytes(C, nattr_pad, jnp.float32)      # weight
             + 2 * _padded_tile_bytes(1, nattr_pad, jnp.float32))   # bias
    reserve = 2 * _MIB                                              # Mosaic scratch/sems
    avail = vmem_limit - fixed - reserve

    per_row = (2 * _padded_tile_bytes(d0, d1, x.dtype)      # double-buffered feature
               + _padded_tile_bytes(d0, d1, jnp.float32)    # worst-case f32 upcast temp
               + 2 * nattr_pad * 4                          # double-buffered output rows
               + _round_up(C, _LANE) * 4)                   # pooled row
    b_tile = int(max(1, min(B, max(0, avail) // per_row)))

    # v7x megacore: keep >= 2 grid steps whenever 8-aligned tiles fit (B >= 16).
    if B >= 16:
        b_tile = min(b_tile, max(8, ((B // 2) // 8) * 8))
    # Output sublane tiling: tiles that do not span the full batch must be 8-aligned.
    if b_tile < B:
        b_tile = (b_tile // 8) * 8 if b_tile >= 8 else min(8, B)
    b_tile = int(min(max(b_tile, 1), B))

    # If the 8-alignment floor pushed us past the nominal budget, raise the
    # limit toward capacity (with headroom) so compilation stays safe.
    projected = fixed + reserve + b_tile * per_row
    vmem_limit = int(min(cap - 4 * _MIB, max(vmem_limit, projected)))

    grid = (pl.cdiv(B, b_tile),)

    # TODO(synk): if a single padded batch row is so large that even b_tile=8
    # overflows the limit, add a second "arbitrary" grid axis over reduction
    # chunks with a VMEM (b_tile, C) accumulator and a pl.when epilogue.

    cost = pl.CostEstimate(
        flops=B * (d0 * d1 + 2 * C * nattr_pad),
        transcendentals=0,
        bytes_accessed=(int(x.size) * x.dtype.itemsize
                        + int(w_pad.size) * 4 + int(b_pad.size) * 4
                        + B * nattr_pad * 4),
    )

    logits_pad = pl.pallas_call(
        kernel,
        out_shape=jax.ShapeDtypeStruct((B, nattr_pad), jnp.float32),
        grid_spec=pltpu.PrefetchScalarGridSpec(
            num_scalar_prefetch=0,
            grid=grid,
            in_specs=[
                pl.BlockSpec((b_tile, d0, d1), lambda i: (i, 0, 0)),
                pl.BlockSpec((C, nattr_pad), lambda i: (0, 0)),
                pl.BlockSpec((1, nattr_pad), lambda i: (0, 0)),
            ],
            out_specs=pl.BlockSpec((b_tile, nattr_pad), lambda i: (i, 0)),
        ),
        compiler_params=pltpu.CompilerParams(
            dimension_semantics=("parallel",),
            vmem_limit_bytes=vmem_limit,
        ),
        cost_estimate=cost,
    )(x, w_pad, b_pad)

    return logits_pad[:, :nattr] if nattr_pad != nattr else logits_pad


def linear_classifier_forward(feature, weight, bias):
    """Forward pass of LinearClassifier(pool='avg', bn=False).

    feature: (B, C, H, W) NCHW (float32 or bfloat16), or (B, HW, C) with
             HW == 16*12 (token form, like the PyTorch module).
    weight : (nattr, c_in)  (PyTorch nn.Linear layout)
    bias   : (nattr,)
    returns: ([logits], feature_out) with logits (B, nattr) float32;
             feature_out is the NCHW feature (permuted for the 3D input path).
    """
    nattr, c_in = weight.shape

    if feature.ndim == 3:
        bt, hw, c = feature.shape
        h, w = 16, 12
        assert hw == h * w, "3D input must have hw == 16*12"
        assert c == c_in
        # Kernel reads the raw (B, HW, C) tensor (cheap sublane reduce); the
        # permuted NCHW feature below is only the module's second return value
        # and never sits on the kernel's HBM read path (DCE'd if unused).
        w_scaled_t = weight.astype(jnp.float32).T * (1.0 / float(hw))
        logits = _run_pooled_linear(
            feature, _pool_mid_linear_kernel, (hw, c), w_scaled_t, bias)
        # TODO(synk): if feature_out is actually consumed downstream, this
        # standalone permute re-reads/re-writes the whole feature in HBM;
        # return the raw (B,HW,C) layout or fuse the permute as a second
        # kernel output instead.
        feature_out = feature.reshape(bt, h, w, c).transpose(0, 3, 1, 2)
        return ([logits], feature_out)

    B, C, H, W = feature.shape
    assert C == c_in
    hw = H * W
    x_flat = feature.reshape(B, C, hw)                 # free reshape (no copy)
    w_scaled_t = weight.astype(jnp.float32).T * (1.0 / float(hw))
    logits = _run_pooled_linear(
        x_flat, _pool_last_linear_kernel, (C, hw), w_scaled_t, bias)
    return ([logits], feature)


if __name__ == "__main__":
    key = jax.random.PRNGKey(0)
    k_feat, k_feat3d, k_w, k_b, k_feat_big, k_w2, k_b2 = jax.random.split(key, 7)

    # --- case 1: 4D NCHW path (float32), single-tile grid ---
    B, C, H, W = 2, 4, 16, 16
    nattr = 8
    bound = 1.0 / (C ** 0.5)
    weight = jax.random.uniform(k_w, (nattr, C), minval=-bound, maxval=bound,
                                dtype=jnp.float32)
    bias = jax.random.uniform(k_b, (nattr,), minval=-bound, maxval=bound,
                              dtype=jnp.float32)

    feature = jax.random.normal(k_feat, (B, C, H, W), dtype=jnp.float32)
    (logits_list, feat_out) = linear_classifier_forward(feature, weight, bias)
    logits = jax.block_until_ready(logits_list[0])
    feat_out = jax.block_until_ready(feat_out)

    pooled_ref = feature.mean(axis=(2, 3))                    # (B, C)
    logits_ref = pooled_ref @ weight.T + bias                 # (B, nattr)
    assert logits.shape == (B, nattr)
    assert jnp.allclose(logits, logits_ref, atol=1e-4, rtol=1e-4)
    assert jnp.array_equal(feat_out, feature)

    # --- case 2: 3D (bt, hw, c) path (bfloat16 feature, no transpose on kernel path) ---
    hw3 = 16 * 12
    feature3d = jax.random.normal(k_feat3d, (B, hw3, C), dtype=jnp.float32)
    feature3d_bf16 = feature3d.astype(jnp.bfloat16)
    (logits3_list, feat3_out) = linear_classifier_forward(
        feature3d_bf16, weight, bias)
    logits3 = jax.block_until_ready(logits3_list[0])
    feat3_out = jax.block_until_ready(feat3_out)

    pooled3_ref = feature3d_bf16.astype(jnp.float32).mean(axis=1)
    logits3_ref = pooled3_ref @ weight.T + bias
    assert logits3.shape == (B, nattr)
    assert jnp.allclose(logits3, logits3_ref, atol=2e-3, rtol=2e-3)

    feat3_ref = feature3d_bf16.reshape(B, 16, 12, C).transpose(0, 3, 1, 2)
    assert feat3_out.shape == (B, C, 16, 12)
    assert jnp.array_equal(feat3_out, feat3_ref)

    # --- case 3: 4D path with a multi-step batch grid (exercises tiling +
    #             partial last block + the two-TensorCore cap) ---
    B2, C2, H2, W2, nattr2 = 20, 8, 8, 8, 5
    bound2 = 1.0 / (C2 ** 0.5)
    weight2 = jax.random.uniform(k_w2, (nattr2, C2), minval=-bound2,
                                 maxval=bound2, dtype=jnp.float32)
    bias2 = jax.random.uniform(k_b2, (nattr2,), minval=-bound2, maxval=bound2,
                               dtype=jnp.float32)
    feature_big = jax.random.normal(k_feat_big, (B2, C2, H2, W2),
                                    dtype=jnp.float32)
    (logits_big_list, _) = linear_classifier_forward(feature_big, weight2, bias2)
    logits_big = jax.block_until_ready(logits_big_list[0])
    logits_big_ref = feature_big.mean(axis=(2, 3)) @ weight2.T + bias2
    assert logits_big.shape == (B2, nattr2)
    assert jnp.allclose(logits_big, logits_big_ref, atol=1e-4, rtol=1e-4)

    print("KERNEL_OK")
</pallas_src>

<mosaic_0001>
module attributes {stable_mosaic.version = 11 : i64} {
  func.func @_pool_last_linear_kernel(%arg0: i32, %arg1: memref<2x4x256xf32, #tpu.memory_space<vmem>>, %arg2: memref<4x128xf32, #tpu.memory_space<vmem>>, %arg3: memref<1x128xf32, #tpu.memory_space<vmem>>, %arg4: memref<2x128xf32, #tpu.memory_space<vmem>>) attributes {dimension_semantics = [#tpu.dimension_semantics<parallel>], iteration_bounds = array<i64: 1>, scalar_prefetch = 0 : i64, scratch_operands = 0 : i64, tpu.core_type = #tpu.core_type<tc>, window_params = [{transform_indices = @transform_0, window_bounds = array<i64: 2, 4, 256>}, {pipeline_mode = #tpu.pipeline_mode<synchronous>, transform_indices = @transform_1, window_bounds = array<i64: 4, 128>}, {pipeline_mode = #tpu.pipeline_mode<synchronous>, transform_indices = @transform_2, window_bounds = array<i64: 1, 128>}, {transform_indices = @transform_3, window_bounds = array<i64: 2, 128>}]} {
    %c0 = arith.constant 0 : index
    %c0_0 = arith.constant 0 : index
    %c0_1 = arith.constant 0 : index
    %0 = vector.load %arg1[%c0, %c0_0, %c0_1] : memref<2x4x256xf32, #tpu.memory_space<vmem>>, vector<2x4x256xf32>
    %cst = arith.constant dense<0.000000e+00> : vector<2x4xf32>
    %1 = vector.multi_reduction <add>, %0, %cst [2] : vector<2x4x256xf32> to vector<2x4xf32>
    %c0_2 = arith.constant 0 : index
    %c0_3 = arith.constant 0 : index
    %2 = vector.load %arg2[%c0_2, %c0_3] : memref<4x128xf32, #tpu.memory_space<vmem>>, vector<4x128xf32>
    %cst_4 = arith.constant dense<0.000000e+00> : vector<2x128xf32>
    %3 = tpu.matmul %1, %2, %cst_4 {dimension_numbers = #tpu.dot_dimension_numbers<[1], [0], [0], [1], [0, 0, 1, 1], [], []>} : vector<2x4xf32>, vector<4x128xf32>, vector<2x128xf32> -> vector<2x128xf32>
    %c0_5 = arith.constant 0 : index
    %c0_6 = arith.constant 0 : index
    %4 = vector.load %arg3[%c0_5, %c0_6] : memref<1x128xf32, #tpu.memory_space<vmem>>, vector<1x128xf32>
    %5 = vector.broadcast %4 : vector<1x128xf32> to vector<2x128xf32>
    %6 = arith.addf %3, %5 : vector<2x128xf32>
    %c0_7 = arith.constant 0 : index
    %c0_8 = arith.constant 0 : index
    %7 = vector.load %arg4[%c0_7, %c0_8] : memref<2x128xf32, #tpu.memory_space<vmem>>, vector<2x128xf32>
    tpu.vector_store %arg4[%c0_7, %c0_8], %6 {strides = array<i32>} : memref<2x128xf32, #tpu.memory_space<vmem>>, vector<2x128xf32>,
    return
  }
  func.func @transform_0(%arg0: i32) -> (i32, i32, i32) {
    %c0_i32 = arith.constant 0 : i32
    %c0_i32_0 = arith.constant 0 : i32
    %c0_i32_1 = arith.constant 0 : i32
    return %arg0, %c0_i32, %c0_i32_0 : i32, i32, i32
  }
  func.func @transform_1(%arg0: i32) -> (i32, i32) {
    %c0_i32 = arith.constant 0 : i32
    %c0_i32_0 = arith.constant 0 : i32
    %c0_i32_1 = arith.constant 0 : i32
    return %c0_i32, %c0_i32_0 : i32, i32
  }
  func.func @transform_2(%arg0: i32) -> (i32, i32) {
    %c0_i32 = arith.constant 0 : i32
    %c0_i32_0 = arith.constant 0 : i32
    %c0_i32_1 = arith.constant 0 : i32
    return %c0_i32, %c0_i32_0 : i32, i32
  }
  func.func @transform_3(%arg0: i32) -> (i32, i32) {
    %c0_i32 = arith.constant 0 : i32
    %c0_i32_0 = arith.constant 0 : i32
    return %arg0, %c0_i32 : i32, i32
  }
}

</mosaic_0001>

<bundles_post_ra>
// kernel: tpu_custom_call.1
= control target key start
LH: loop header
LB: loop body
LE: loop exit
PB: predicated region body
PF: predicated region fallthrough
CT: control target
= control target key end

     0   :  { %8 = vsyncpa [#allocation3], 0  ;;  %s304_s0 = inlined_call_operand.hbm [shape: f32[2,4,256], index: 0, kind: input, shape index: {}]   ;;  %s305_s1 = inlined_call_operand.hbm [shape: f32[4,128], index: 1, kind: input, shape index: {}]   ;;  %s306_s2 = inlined_call_operand.vmem [shape: f32[1,128], index: 2, kind: input, shape index: {}]   ;;  %s307_s3 = inlined_call_operand.hbm [shape: f32[2,128], index: 3, kind: output, shape index: {}]  }
   0x1   :  { %9 = vsyncpa [#allocation6], 0 }
   0x2   :  { %10 = vsyncpa [#allocation4], 0  ;;  %s260_s12 = smov [#allocation2]  }
   0x3   :  { %s16_s13 = sshll.u32 %s260_s12, 4  ;;  %s17_s13 = int_to_ptr.vmem [resolvable:$true] %s16_s13 }
   0x4   :  { %s202_s14 = scalar_lea.vmem %s17_s13, 256  ;;  %p207_p1 = scmp.lt.s32.totalorder %s17_s13, %s17_s13 }
   0x5   :  { %p203_p0 = scmp.ne.s32.totalorder %s17_s13, %s202_s14  ;;  %p208_p2 = scmp.lt.s32.totalorder %s202_s14, %s202_s14 }
   0x7   :  { %p209_p3 = por %p208_p2, %p207_p1 }
   0x9   :  { %p210_p4 = pnand %p209_p3, %p203_p0 }
   0xb   :  { %213 = shalt.err (!%p210_p4)
}
   0xc   :  { %s261_s15 = smov 128   ;;  %s262_s16 = smov 8  }
   0xd   :  { %22 = dma.hbm_to_vmem [thread:$0]  %s304_s0, 256, %s17_s13, [#allocation3], %s261_s15, %s261_s15, %s262_s16  }
   0xe   :  { %s263_s19 = smov [#allocation5]  }
   0xf   :  { %s29_s20 = sshll.u32 %s263_s19, 4  ;;  %s30_s20 = int_to_ptr.vmem [resolvable:$true] %s29_s20 }
  0x10   :  { %s222_s21 = scalar_lea.vmem %s30_s20, 64  ;;  %p227_p6 = scmp.lt.s32.totalorder %s30_s20, %s30_s20 }
  0x11   :  { %p223_p5 = scmp.ne.s32.totalorder %s30_s20, %s222_s21  ;;  %p228_p7 = scmp.lt.s32.totalorder %s222_s21, %s222_s21 }
  0x13   :  { %p229_p8 = por %p228_p7, %p227_p6 }
  0x15   :  { %p230_p9 = pnand %p229_p8, %p223_p5 }
  0x17   :  { %233 = shalt.err (!%p230_p9)
}
  0x18   :  { %32 = dma.hbm_to_vmem [thread:$0]  %s305_s1, 64, %s30_s20, [#allocation6]  }
  0x19   :  { %254 = dma.done.wait [#allocation3], 256  }
  0x1a   :  { %255 = vsyncadd [#allocation3], 4294967040 }
  0x1b   :  { %256 = dma.done.wait [#allocation6], 64  }
  0x1c   :  { %257 = vsyncadd [#allocation6], 4294967232  ;;  %vm49_vm0 = vcmask 1043456   ;;  %v41_v0 = vld [vmem:[#allocation2] sm:$0xff]  ;;  %v42_v1 = vld [vmem:[#allocation2 + $0x8] sm:$0xff]  ;;  %v264_v11 = vmov 0.0   ;;  %v70_v12 = vlaneseq }
  0x1d   :  { %v45_v2 = vcombine.high %v41_v0, %v41_v0  ;;  %v50_v3 = vsel %vm49_vm0, %v41_v0, 0.0  ;;  %v46_v4 = vcombine.high %v42_v1, %v42_v1  ;;  %v55_v6 = vsel %vm49_vm0, %v42_v1, 0.0  ;;  %v60_v10 = vld [vmem:[#allocation5] sm:$0xf]  ;;  %180 = vmatprep.subr.mxu0 %v264_v11  ;;  %v175_v21 = vld [vmem:[%s306_s2] ss:$0 sm:$0xff] }
  0x1e   :  { %vm265_vm1 = vmmov 0   ;;  %181 = vmatpush3.msk.msra.mxu0 %vm49_vm0, %v60_v10  ;;  %v71_v13 = vand.u32 127, %v70_v12  ;;  %v73_v14 = vshrl.u32 %v70_v12, 7  ;;  %vm80_vm2 = vcmask 1041409   ;;  %s266_s24 = smov [#allocation7]  }
  0x1f   :  { %v51_v5 = vsel %vm49_vm0, %v45_v2, 0.0  ;;  %v56_v7 = vsel %vm49_vm0, %v46_v4, 0.0  ;;  %182 = vmatprep.mubr.msk.f32.mxu0 %vm265_vm1, %v264_v11  ;;  %vm82_vm3 = vcmask 31744   ;;  %s165_s25 = sshll.u32 %s266_s24, 4  ;;  %s166_s25 = int_to_ptr.vmem [resolvable:$true] %s165_s25 }
  0x20   :  { %v52_v8 = vadd.f32 %v51_v5, %v50_v3  ;;  %v57_v9 = vadd.f32 %v56_v7, %v55_v6  ;;  %v74_v16 = vsub.s32 %v71_v13, %v73_v14  ;;  %s234_s26 = scalar_lea.vmem %s166_s25, 32  ;;  %p239_p11 = scmp.lt.s32.totalorder %s166_s25, %s166_s25 }
  0x21   :  { %p235_p10 = scmp.ne.s32.totalorder %s166_s25, %s234_s26  ;;  %p240_p12 = scmp.lt.s32.totalorder %s234_s26, %s234_s26 }
  0x22   :  { %53 = vadd.xlane.f32.xlu0 %v52_v8 }
  0x23   :  { %p241_p13 = por %p240_p12, %p239_p11 }
  0x25   :  { %p242_p0 = pnand %p241_p13, %p235_p10 }
  0x26   :  { %58 = vadd.xlane.f32.xlu0 %v57_v9 }
  0xab   :  { %v54_v15 = vpop.xlane.xlu0 %53 }
  0xac   :  { %v75_v18 = vrot.slane %v54_v15, %v74_v16 }
  0xaf   :  { %v59_v17 = vpop.xlane.xlu0 %58 }
  0xb0   :  { %v79_v19 = vrot.slane %v59_v17, %v74_v16 }
  0xb2   :  { %v81_v20 = vsel %vm80_vm2, %v79_v19, %v75_v18 }
  0xb3   :  { %183 = vmatmul.mubr.msk.f32.vlgmr.msra.gmra.mxu0 %vm82_vm3, %v81_v20 }
 0x173   :  { %v154_v22 = vpop.f32.mrf.mxu0 }
 0x174   :  { %v155_v23 = vadd.f32 %v175_v21, %v154_v22 }
 0x175   :  { %v184_v24 = vpop.f32.mrf.mxu0 }
 0x176   :  { %158 = vst [vmem:[#allocation7] sm:$0x3] %v155_v23 }
 0x177   :  { %245 = shalt.err (!%p242_p0)
}
 0x178   :  { %168 = dma.vmem_to_hbm [thread:$0]  %s166_s25, 32, %s307_s3, [#allocation4]  }
 0x179   :  { %258 = dma.done.wait [#allocation4], 32  }
 0x17a   :  { %259 = vsyncadd [#allocation4], 4294967264 }
 0x17b   :  { %172 = vsyncpa [#allocation3], 1 }
 0x17c   :  { %173 = vsyncpa [#allocation6], 1 }
 0x17d   :  { %174 = vsyncpa [#allocation4], 1 }

</bundles_post_ra>
